<compile_context>
chip_gen: v5e
topology: v5e:2x2
jax: 0.10.0
libtpu: 0.0.40
codegen_flags: <defaults>
</compile_context>

<pallas_src>
import functools

import jax
import jax.numpy as jnp
from jax.experimental import pallas as pl
from jax.experimental.pallas import tpu as pltpu


def _self_attn_kernel(x_ref, wq_ref, wk_ref, wv_ref, wo_ref,
                      bq_ref, bk_ref, bv_ref, bo_ref, o_ref,
                      *, n_heads: int, head_dim: int):
    # x_ref : (TB, L, C) tile of batch elements.
    # w*_ref: (C, C) pre-transposed weights (in_features, out_features).
    # b*_ref: (1, C) biases.
    # o_ref : (TB, C) -- W_o output at sequence position 0.
    x = x_ref[...].astype(jnp.float32)                       # (TB, L, C)
    tb, L, C = x.shape

    wq = wq_ref[...].astype(jnp.float32)
    wk = wk_ref[...].astype(jnp.float32)
    wv = wv_ref[...].astype(jnp.float32)
    wo = wo_ref[...].astype(jnp.float32)
    bq = bq_ref[...].astype(jnp.float32)
    bk = bk_ref[...].astype(jnp.float32)
    bv = bv_ref[...].astype(jnp.float32)
    bo = bo_ref[...].astype(jnp.float32)

    # K / V projections need every position: fold (TB, L) into rows for one
    # big MXU matmul per projection.
    x2 = x.reshape(tb * L, C)
    k = (jnp.dot(x2, wk, preferred_element_type=jnp.float32) + bk).reshape(tb, L, C)
    v = (jnp.dot(x2, wv, preferred_element_type=jnp.float32) + bv).reshape(tb, L, C)

    # Only the query at position 0 is consumed downstream.
    q0 = jnp.dot(x[:, 0, :], wq, preferred_element_type=jnp.float32) + bq   # (TB, C)

    scale = 1.0 / (head_dim ** 0.5)
    acc = jnp.zeros((tb, C), jnp.float32)

    for h in range(n_heads):                                 # static unroll (small)
        hs, he = h * head_dim, (h + 1) * head_dim
        qh = q0[:, hs:he].reshape(tb, 1, head_dim)           # (TB, 1, Hd)
        kh = k[:, :, hs:he]                                  # (TB, L, Hd)
        vh = v[:, :, hs:he]                                  # (TB, L, Hd)

        s = jnp.einsum('bqd,bkd->bqk', qh, kh,
                       preferred_element_type=jnp.float32) * scale   # (TB, 1, L)
        s = s - jnp.max(s, axis=-1, keepdims=True)
        p = jnp.exp(s)
        p = p / jnp.sum(p, axis=-1, keepdims=True)
        oh = jnp.einsum('bqk,bkd->bqd', p, vh,
                        preferred_element_type=jnp.float32)           # (TB, 1, Hd)

        # Fold this head's W_o column block into the accumulator: avoids ever
        # materializing / concatenating the full context tensor.
        acc = acc + jnp.dot(oh.reshape(tb, head_dim), wo[hs:he, :],
                            preferred_element_type=jnp.float32)

    o_ref[...] = (acc + bo).astype(o_ref.dtype)


def _pick_batch_tile(B, L, C, itemsize, target_bytes=2 << 20, max_tile=256):
    """Batch-tile so the x tile is ~target_bytes, sublane-aligned when possible."""
    per_batch = max(1, L * C * itemsize)
    tb = max(1, target_bytes // per_batch)
    tb = int(min(tb, B, max_tile))
    if B >= 8 and tb >= 8:
        tb = (tb // 8) * 8          # 8-aligned second-to-last dim of the output block
    return tb


def self_attn_encoder(x, wq, bq, wk, bk, wv, bv, wo, bo,
                      *, n_heads, is_agent=True, batch_tile=None):
    """Pallas SelfAttnEncoder forward.

    x: (meta_batch, batch_size, C) if is_agent else (meta_batch, batch_size, n_agents, C)
    w*: (C, C) torch-Linear weights (out_features, in_features); b*: (C,).
    Returns (meta_batch, C) if is_agent else (meta_batch, batch_size, C).
    """
    if is_agent:
        meta, bsz, C = x.shape
        x3 = x
    else:
        meta, bsz, n_agents, C = x.shape
        x3 = x.reshape(meta * bsz, n_agents, C)

    B, L, _ = x3.shape
    assert C % n_heads == 0, 'd_model should be divisible by n_heads'
    head_dim = C // n_heads
    for w in (wq, wk, wv, wo):
        assert w.shape == (C, C)
    for b in (bq, bk, bv, bo):
        assert b.shape == (C,)

    # torch Linear: y = x @ W.T + b  ->  pass W.T so the kernel does a plain matmul.
    wq_t, wk_t, wv_t, wo_t = wq.T, wk.T, wv.T, wo.T
    bq2, bk2, bv2, bo2 = (b.reshape(1, C) for b in (bq, bk, bv, bo))

    itemsize = jnp.dtype(x.dtype).itemsize
    tb = batch_tile if batch_tile is not None else _pick_batch_tile(B, L, C, itemsize)
    grid = (pl.cdiv(B, tb),)

    out = pl.pallas_call(
        functools.partial(_self_attn_kernel, n_heads=n_heads, head_dim=head_dim),
        out_shape=jax.ShapeDtypeStruct((B, C), x.dtype),
        grid_spec=pltpu.PrefetchScalarGridSpec(
            num_scalar_prefetch=0,
            grid=grid,
            in_specs=[
                pl.BlockSpec((tb, L, C), lambda b: (b, 0, 0)),   # x tile
                pl.BlockSpec((C, C), lambda b: (0, 0)),          # W_q^T (resident)
                pl.BlockSpec((C, C), lambda b: (0, 0)),          # W_k^T
                pl.BlockSpec((C, C), lambda b: (0, 0)),          # W_v^T
                pl.BlockSpec((C, C), lambda b: (0, 0)),          # W_o^T
                pl.BlockSpec((1, C), lambda b: (0, 0)),          # b_q
                pl.BlockSpec((1, C), lambda b: (0, 0)),          # b_k
                pl.BlockSpec((1, C), lambda b: (0, 0)),          # b_v
                pl.BlockSpec((1, C), lambda b: (0, 0)),          # b_o
            ],
            out_specs=pl.BlockSpec((tb, C), lambda b: (b, 0)),
        ),
        compiler_params=pltpu.CompilerParams(
            dimension_semantics=("parallel",),        # batch axis shards across TCs (v7x)
            vmem_limit_bytes=32 * 1024 * 1024,        # safe on v5e/v6e/v7x
        ),
    )(x3, wq_t, wk_t, wv_t, wo_t, bq2, bk2, bv2, bo2)

    if is_agent:
        return out
    return out.reshape(meta, bsz, C)


def _reference(x, wq, bq, wk, bk, wv, bv, wo, bo, n_heads, is_agent=True):
    """Plain-JAX reference mirroring the PyTorch forward exactly (full attention)."""
    if not is_agent:
        meta, bsz, n_agents, C = x.shape
        xr = x.reshape(meta * bsz, n_agents, C)
    else:
        meta, bsz, C = x.shape
        xr = x
    B, L, _ = xr.shape
    Hd = C // n_heads

    def lin(z, w, b):
        return jnp.einsum('blc,dc->bld', z, w) + b

    q = lin(xr, wq, bq).reshape(B, L, n_heads, Hd).transpose(0, 2, 1, 3)
    k = lin(xr, wk, bk).reshape(B, L, n_heads, Hd).transpose(0, 2, 1, 3)
    v = lin(xr, wv, bv).reshape(B, L, n_heads, Hd).transpose(0, 2, 1, 3)
    attn = jnp.einsum('bhqd,bhkd->bhqk', q, k) / (Hd ** 0.5)
    attn = jax.nn.softmax(attn, axis=-1)
    ctx = jnp.einsum('bhqk,bhkd->bhqd', attn, v)
    ctx = ctx.transpose(0, 2, 1, 3).reshape(B, L, C)
    out = (jnp.einsum('blc,dc->bld', ctx, wo) + bo)[:, 0]
    if not is_agent:
        out = out.reshape(meta, bsz, C)
    return out


if __name__ == "__main__":
    key = jax.random.PRNGKey(0)
    meta_batch, batch_size, context_dim, n_heads = 2, 8, 32, 4   # head_dim = 8

    keys = jax.random.split(key, 9)
    x = jax.random.normal(keys[0], (meta_batch, batch_size, context_dim), jnp.float32)

    def mk_w(k):
        return jax.random.normal(k, (context_dim, context_dim), jnp.float32) / jnp.sqrt(
            jnp.float32(context_dim))

    def mk_b(k):
        return 0.1 * jax.random.normal(k, (context_dim,), jnp.float32)

    wq, wk, wv, wo = mk_w(keys[1]), mk_w(keys[2]), mk_w(keys[3]), mk_w(keys[4])
    bq, bk, bv, bo = mk_b(keys[5]), mk_b(keys[6]), mk_b(keys[7]), mk_b(keys[8])

    out = self_attn_encoder(x, wq, bq, wk, bk, wv, bv, wo, bo,
                            n_heads=n_heads, is_agent=True)
    out = jax.block_until_ready(out)

    ref = _reference(x, wq, bq, wk, bk, wv, bv, wo, bo, n_heads, is_agent=True)
    assert out.shape == (meta_batch, context_dim) and out.dtype == x.dtype
    assert jnp.max(jnp.abs(out - ref)) < 2e-4, "mismatch vs reference"

    print("KERNEL_OK")
</pallas_src>

<mosaic_0001>
module attributes {stable_mosaic.version = 11 : i64} {
  func.func @_self_attn_kernel(%arg0: i32, %arg1: memref<2x8x32xf32, #tpu.memory_space<vmem>>, %arg2: memref<32x32xf32, #tpu.memory_space<vmem>>, %arg3: memref<32x32xf32, #tpu.memory_space<vmem>>, %arg4: memref<32x32xf32, #tpu.memory_space<vmem>>, %arg5: memref<32x32xf32, #tpu.memory_space<vmem>>, %arg6: memref<1x32xf32, #tpu.memory_space<vmem>>, %arg7: memref<1x32xf32, #tpu.memory_space<vmem>>, %arg8: memref<1x32xf32, #tpu.memory_space<vmem>>, %arg9: memref<1x32xf32, #tpu.memory_space<vmem>>, %arg10: memref<2x32xf32, #tpu.memory_space<vmem>>) attributes {dimension_semantics = [#tpu.dimension_semantics<parallel>], iteration_bounds = array<i64: 1>, scalar_prefetch = 0 : i64, scratch_operands = 0 : i64, tpu.core_type = #tpu.core_type<tc>, window_params = [{transform_indices = @transform_0, window_bounds = array<i64: 2, 8, 32>}, {pipeline_mode = #tpu.pipeline_mode<synchronous>, transform_indices = @transform_1, window_bounds = array<i64: 32, 32>}, {pipeline_mode = #tpu.pipeline_mode<synchronous>, transform_indices = @transform_2, window_bounds = array<i64: 32, 32>}, {pipeline_mode = #tpu.pipeline_mode<synchronous>, transform_indices = @transform_3, window_bounds = array<i64: 32, 32>}, {pipeline_mode = #tpu.pipeline_mode<synchronous>, transform_indices = @transform_4, window_bounds = array<i64: 32, 32>}, {pipeline_mode = #tpu.pipeline_mode<synchronous>, transform_indices = @transform_5, window_bounds = array<i64: 1, 32>}, {pipeline_mode = #tpu.pipeline_mode<synchronous>, transform_indices = @transform_6, window_bounds = array<i64: 1, 32>}, {pipeline_mode = #tpu.pipeline_mode<synchronous>, transform_indices = @transform_7, window_bounds = array<i64: 1, 32>}, {pipeline_mode = #tpu.pipeline_mode<synchronous>, transform_indices = @transform_8, window_bounds = array<i64: 1, 32>}, {transform_indices = @transform_9, window_bounds = array<i64: 2, 32>}]} {
    %c0 = arith.constant 0 : index
    %c0_0 = arith.constant 0 : index
    %c0_1 = arith.constant 0 : index
    %0 = vector.load %arg1[%c0, %c0_0, %c0_1] : memref<2x8x32xf32, #tpu.memory_space<vmem>>, vector<2x8x32xf32>
    %c0_2 = arith.constant 0 : index
    %c0_3 = arith.constant 0 : index
    %1 = vector.load %arg2[%c0_2, %c0_3] : memref<32x32xf32, #tpu.memory_space<vmem>>, vector<32x32xf32>
    %c0_4 = arith.constant 0 : index
    %c0_5 = arith.constant 0 : index
    %2 = vector.load %arg3[%c0_4, %c0_5] : memref<32x32xf32, #tpu.memory_space<vmem>>, vector<32x32xf32>
    %c0_6 = arith.constant 0 : index
    %c0_7 = arith.constant 0 : index
    %3 = vector.load %arg4[%c0_6, %c0_7] : memref<32x32xf32, #tpu.memory_space<vmem>>, vector<32x32xf32>
    %c0_8 = arith.constant 0 : index
    %c0_9 = arith.constant 0 : index
    %4 = vector.load %arg5[%c0_8, %c0_9] : memref<32x32xf32, #tpu.memory_space<vmem>>, vector<32x32xf32>
    %c0_10 = arith.constant 0 : index
    %c0_11 = arith.constant 0 : index
    %5 = vector.load %arg6[%c0_10, %c0_11] : memref<1x32xf32, #tpu.memory_space<vmem>>, vector<1x32xf32>
    %c0_12 = arith.constant 0 : index
    %c0_13 = arith.constant 0 : index
    %6 = vector.load %arg7[%c0_12, %c0_13] : memref<1x32xf32, #tpu.memory_space<vmem>>, vector<1x32xf32>
    %c0_14 = arith.constant 0 : index
    %c0_15 = arith.constant 0 : index
    %7 = vector.load %arg8[%c0_14, %c0_15] : memref<1x32xf32, #tpu.memory_space<vmem>>, vector<1x32xf32>
    %c0_16 = arith.constant 0 : index
    %c0_17 = arith.constant 0 : index
    %8 = vector.load %arg9[%c0_16, %c0_17] : memref<1x32xf32, #tpu.memory_space<vmem>>, vector<1x32xf32>
    %9 = vector.shape_cast %0 : vector<2x8x32xf32> to vector<16x32xf32>
    %cst = arith.constant dense<0.000000e+00> : vector<16x32xf32>
    %10 = tpu.matmul %9, %2, %cst {dimension_numbers = #tpu.dot_dimension_numbers<[1], [0], [0], [1], [0, 0, 1, 1], [], []>} : vector<16x32xf32>, vector<32x32xf32>, vector<16x32xf32> -> vector<16x32xf32>
    %11 = vector.broadcast %6 : vector<1x32xf32> to vector<16x32xf32>
    %12 = arith.addf %10, %11 : vector<16x32xf32>
    %13 = vector.shape_cast %12 : vector<16x32xf32> to vector<2x8x32xf32>
    %cst_18 = arith.constant dense<0.000000e+00> : vector<16x32xf32>
    %14 = tpu.matmul %9, %3, %cst_18 {dimension_numbers = #tpu.dot_dimension_numbers<[1], [0], [0], [1], [0, 0, 1, 1], [], []>} : vector<16x32xf32>, vector<32x32xf32>, vector<16x32xf32> -> vector<16x32xf32>
    %15 = vector.broadcast %7 : vector<1x32xf32> to vector<16x32xf32>
    %16 = arith.addf %14, %15 : vector<16x32xf32>
    %17 = vector.shape_cast %16 : vector<16x32xf32> to vector<2x8x32xf32>
    %18 = vector.extract_strided_slice %0 {offsets = [0, 0, 0], sizes = [2, 1, 32], strides = [1, 1, 1]} : vector<2x8x32xf32> to vector<2x1x32xf32>
    %19 = vector.shape_cast %18 : vector<2x1x32xf32> to vector<2x32xf32>
    %cst_19 = arith.constant dense<0.000000e+00> : vector<2x32xf32>
    %20 = tpu.matmul %19, %1, %cst_19 {dimension_numbers = #tpu.dot_dimension_numbers<[1], [0], [0], [1], [0, 0, 1, 1], [], []>} : vector<2x32xf32>, vector<32x32xf32>, vector<2x32xf32> -> vector<2x32xf32>
    %21 = vector.broadcast %5 : vector<1x32xf32> to vector<2x32xf32>
    %22 = arith.addf %20, %21 : vector<2x32xf32>
    %cst_20 = arith.constant 0.000000e+00 : f32
    %23 = vector.broadcast %cst_20 : f32 to vector<2x32xf32>
    %24 = vector.extract_strided_slice %22 {offsets = [0, 0], sizes = [2, 8], strides = [1, 1]} : vector<2x32xf32> to vector<2x8xf32>
    %25 = vector.shape_cast %24 : vector<2x8xf32> to vector<2x1x8xf32>
    %26 = vector.extract_strided_slice %13 {offsets = [0, 0, 0], sizes = [2, 8, 8], strides = [1, 1, 1]} : vector<2x8x32xf32> to vector<2x8x8xf32>
    %27 = vector.extract_strided_slice %17 {offsets = [0, 0, 0], sizes = [2, 8, 8], strides = [1, 1, 1]} : vector<2x8x32xf32> to vector<2x8x8xf32>
    "tpu.trace_start"() <{level = 10 : i32, message = "bqd,bkd->bqk"}> : () -> ()
    %cst_21 = arith.constant dense<0.000000e+00> : vector<2x1x8xf32>
    %28 = tpu.matmul %25, %26, %cst_21 {dimension_numbers = #tpu.dot_dimension_numbers<[2], [2], [1], [1], [0, 0, 0, 1, 1, 1], [0], [0]>} : vector<2x1x8xf32>, vector<2x8x8xf32>, vector<2x1x8xf32> -> vector<2x1x8xf32>
    "tpu.trace_stop"() : () -> ()
    %cst_22 = arith.constant 0.353553385 : f32
    %29 = vector.broadcast %cst_22 : f32 to vector<2x1x8xf32>
    %30 = arith.mulf %28, %29 : vector<2x1x8xf32>
    %cst_23 = arith.constant dense<0xFF800000> : vector<2x1xf32>
    %31 = vector.multi_reduction <maximumf>, %30, %cst_23 [2] : vector<2x1x8xf32> to vector<2x1xf32>
    %32 = vector.shape_cast %31 : vector<2x1xf32> to vector<2x1x1xf32>
    %33 = vector.broadcast %32 : vector<2x1x1xf32> to vector<2x1x8xf32>
    %34 = arith.subf %30, %33 : vector<2x1x8xf32>
    %35 = math.exp %34 : vector<2x1x8xf32>
    %cst_24 = arith.constant dense<0.000000e+00> : vector<2x1xf32>
    %36 = vector.multi_reduction <add>, %35, %cst_24 [2] : vector<2x1x8xf32> to vector<2x1xf32>
    %37 = vector.shape_cast %36 : vector<2x1xf32> to vector<2x1x1xf32>
    %38 = vector.broadcast %37 : vector<2x1x1xf32> to vector<2x1x8xf32>
    %39 = arith.divf %35, %38 : vector<2x1x8xf32>
    "tpu.trace_start"() <{level = 10 : i32, message = "bqk,bkd->bqd"}> : () -> ()
    %cst_25 = arith.constant dense<0.000000e+00> : vector<2x1x8xf32>
    %40 = tpu.matmul %39, %27, %cst_25 {dimension_numbers = #tpu.dot_dimension_numbers<[2], [1], [1], [2], [0, 0, 0, 1, 1, 2], [0], [0]>} : vector<2x1x8xf32>, vector<2x8x8xf32>, vector<2x1x8xf32> -> vector<2x1x8xf32>
    "tpu.trace_stop"() : () -> ()
    %41 = vector.shape_cast %40 : vector<2x1x8xf32> to vector<2x8xf32>
    %42 = vector.extract_strided_slice %4 {offsets = [0, 0], sizes = [8, 32], strides = [1, 1]} : vector<32x32xf32> to vector<8x32xf32>
    %cst_26 = arith.constant dense<0.000000e+00> : vector<2x32xf32>
    %43 = tpu.matmul %41, %42, %cst_26 {dimension_numbers = #tpu.dot_dimension_numbers<[1], [0], [0], [1], [0, 0, 1, 1], [], []>} : vector<2x8xf32>, vector<8x32xf32>, vector<2x32xf32> -> vector<2x32xf32>
    %44 = arith.addf %23, %43 : vector<2x32xf32>
    %45 = vector.extract_strided_slice %22 {offsets = [0, 8], sizes = [2, 8], strides = [1, 1]} : vector<2x32xf32> to vector<2x8xf32>
    %46 = vector.shape_cast %45 : vector<2x8xf32> to vector<2x1x8xf32>
    %47 = vector.extract_strided_slice %13 {offsets = [0, 0, 8], sizes = [2, 8, 8], strides = [1, 1, 1]} : vector<2x8x32xf32> to vector<2x8x8xf32>
    %48 = vector.extract_strided_slice %17 {offsets = [0, 0, 8], sizes = [2, 8, 8], strides = [1, 1, 1]} : vector<2x8x32xf32> to vector<2x8x8xf32>
    "tpu.trace_start"() <{level = 10 : i32, message = "bqd,bkd->bqk"}> : () -> ()
    %cst_27 = arith.constant dense<0.000000e+00> : vector<2x1x8xf32>
    %49 = tpu.matmul %46, %47, %cst_27 {dimension_numbers = #tpu.dot_dimension_numbers<[2], [2], [1], [1], [0, 0, 0, 1, 1, 1], [0], [0]>} : vector<2x1x8xf32>, vector<2x8x8xf32>, vector<2x1x8xf32> -> vector<2x1x8xf32>
    "tpu.trace_stop"() : () -> ()
    %cst_28 = arith.constant 0.353553385 : f32
    %50 = vector.broadcast %cst_28 : f32 to vector<2x1x8xf32>
    %51 = arith.mulf %49, %50 : vector<2x1x8xf32>
    %cst_29 = arith.constant dense<0xFF800000> : vector<2x1xf32>
    %52 = vector.multi_reduction <maximumf>, %51, %cst_29 [2] : vector<2x1x8xf32> to vector<2x1xf32>
    %53 = vector.shape_cast %52 : vector<2x1xf32> to vector<2x1x1xf32>
    %54 = vector.broadcast %53 : vector<2x1x1xf32> to vector<2x1x8xf32>
    %55 = arith.subf %51, %54 : vector<2x1x8xf32>
    %56 = math.exp %55 : vector<2x1x8xf32>
    %cst_30 = arith.constant dense<0.000000e+00> : vector<2x1xf32>
    %57 = vector.multi_reduction <add>, %56, %cst_30 [2] : vector<2x1x8xf32> to vector<2x1xf32>
    %58 = vector.shape_cast %57 : vector<2x1xf32> to vector<2x1x1xf32>
    %59 = vector.broadcast %58 : vector<2x1x1xf32> to vector<2x1x8xf32>
    %60 = arith.divf %56, %59 : vector<2x1x8xf32>
    "tpu.trace_start"() <{level = 10 : i32, message = "bqk,bkd->bqd"}> : () -> ()
    %cst_31 = arith.constant dense<0.000000e+00> : vector<2x1x8xf32>
    %61 = tpu.matmul %60, %48, %cst_31 {dimension_numbers = #tpu.dot_dimension_numbers<[2], [1], [1], [2], [0, 0, 0, 1, 1, 2], [0], [0]>} : vector<2x1x8xf32>, vector<2x8x8xf32>, vector<2x1x8xf32> -> vector<2x1x8xf32>
    "tpu.trace_stop"() : () -> ()
    %62 = vector.shape_cast %61 : vector<2x1x8xf32> to vector<2x8xf32>
    %63 = vector.extract_strided_slice %4 {offsets = [8, 0], sizes = [8, 32], strides = [1, 1]} : vector<32x32xf32> to vector<8x32xf32>
    %cst_32 = arith.constant dense<0.000000e+00> : vector<2x32xf32>
    %64 = tpu.matmul %62, %63, %cst_32 {dimension_numbers = #tpu.dot_dimension_numbers<[1], [0], [0], [1], [0, 0, 1, 1], [], []>} : vector<2x8xf32>, vector<8x32xf32>, vector<2x32xf32> -> vector<2x32xf32>
    %65 = arith.addf %44, %64 : vector<2x32xf32>
    %66 = vector.extract_strided_slice %22 {offsets = [0, 16], sizes = [2, 8], strides = [1, 1]} : vector<2x32xf32> to vector<2x8xf32>
    %67 = vector.shape_cast %66 : vector<2x8xf32> to vector<2x1x8xf32>
    %68 = vector.extract_strided_slice %13 {offsets = [0, 0, 16], sizes = [2, 8, 8], strides = [1, 1, 1]} : vector<2x8x32xf32> to vector<2x8x8xf32>
    %69 = vector.extract_strided_slice %17 {offsets = [0, 0, 16], sizes = [2, 8, 8], strides = [1, 1, 1]} : vector<2x8x32xf32> to vector<2x8x8xf32>
    "tpu.trace_start"() <{level = 10 : i32, message = "bqd,bkd->bqk"}> : () -> ()
    %cst_33 = arith.constant dense<0.000000e+00> : vector<2x1x8xf32>
    %70 = tpu.matmul %67, %68, %cst_33 {dimension_numbers = #tpu.dot_dimension_numbers<[2], [2], [1], [1], [0, 0, 0, 1, 1, 1], [0], [0]>} : vector<2x1x8xf32>, vector<2x8x8xf32>, vector<2x1x8xf32> -> vector<2x1x8xf32>
    "tpu.trace_stop"() : () -> ()
    %cst_34 = arith.constant 0.353553385 : f32
    %71 = vector.broadcast %cst_34 : f32 to vector<2x1x8xf32>
    %72 = arith.mulf %70, %71 : vector<2x1x8xf32>
    %cst_35 = arith.constant dense<0xFF800000> : vector<2x1xf32>
    %73 = vector.multi_reduction <maximumf>, %72, %cst_35 [2] : vector<2x1x8xf32> to vector<2x1xf32>
    %74 = vector.shape_cast %73 : vector<2x1xf32> to vector<2x1x1xf32>
    %75 = vector.broadcast %74 : vector<2x1x1xf32> to vector<2x1x8xf32>
    %76 = arith.subf %72, %75 : vector<2x1x8xf32>
    %77 = math.exp %76 : vector<2x1x8xf32>
    %cst_36 = arith.constant dense<0.000000e+00> : vector<2x1xf32>
    %78 = vector.multi_reduction <add>, %77, %cst_36 [2] : vector<2x1x8xf32> to vector<2x1xf32>
    %79 = vector.shape_cast %78 : vector<2x1xf32> to vector<2x1x1xf32>
    %80 = vector.broadcast %79 : vector<2x1x1xf32> to vector<2x1x8xf32>
    %81 = arith.divf %77, %80 : vector<2x1x8xf32>
    "tpu.trace_start"() <{level = 10 : i32, message = "bqk,bkd->bqd"}> : () -> ()
    %cst_37 = arith.constant dense<0.000000e+00> : vector<2x1x8xf32>
    %82 = tpu.matmul %81, %69, %cst_37 {dimension_numbers = #tpu.dot_dimension_numbers<[2], [1], [1], [2], [0, 0, 0, 1, 1, 2], [0], [0]>} : vector<2x1x8xf32>, vector<2x8x8xf32>, vector<2x1x8xf32> -> vector<2x1x8xf32>
    "tpu.trace_stop"() : () -> ()
    %83 = vector.shape_cast %82 : vector<2x1x8xf32> to vector<2x8xf32>
    %84 = vector.extract_strided_slice %4 {offsets = [16, 0], sizes = [8, 32], strides = [1, 1]} : vector<32x32xf32> to vector<8x32xf32>
    %cst_38 = arith.constant dense<0.000000e+00> : vector<2x32xf32>
    %85 = tpu.matmul %83, %84, %cst_38 {dimension_numbers = #tpu.dot_dimension_numbers<[1], [0], [0], [1], [0, 0, 1, 1], [], []>} : vector<2x8xf32>, vector<8x32xf32>, vector<2x32xf32> -> vector<2x32xf32>
    %86 = arith.addf %65, %85 : vector<2x32xf32>
    %87 = vector.extract_strided_slice %22 {offsets = [0, 24], sizes = [2, 8], strides = [1, 1]} : vector<2x32xf32> to vector<2x8xf32>
    %88 = vector.shape_cast %87 : vector<2x8xf32> to vector<2x1x8xf32>
    %89 = vector.extract_strided_slice %13 {offsets = [0, 0, 24], sizes = [2, 8, 8], strides = [1, 1, 1]} : vector<2x8x32xf32> to vector<2x8x8xf32>
    %90 = vector.extract_strided_slice %17 {offsets = [0, 0, 24], sizes = [2, 8, 8], strides = [1, 1, 1]} : vector<2x8x32xf32> to vector<2x8x8xf32>
    "tpu.trace_start"() <{level = 10 : i32, message = "bqd,bkd->bqk"}> : () -> ()
    %cst_39 = arith.constant dense<0.000000e+00> : vector<2x1x8xf32>
    %91 = tpu.matmul %88, %89, %cst_39 {dimension_numbers = #tpu.dot_dimension_numbers<[2], [2], [1], [1], [0, 0, 0, 1, 1, 1], [0], [0]>} : vector<2x1x8xf32>, vector<2x8x8xf32>, vector<2x1x8xf32> -> vector<2x1x8xf32>
    "tpu.trace_stop"() : () -> ()
    %cst_40 = arith.constant 0.353553385 : f32
    %92 = vector.broadcast %cst_40 : f32 to vector<2x1x8xf32>
    %93 = arith.mulf %91, %92 : vector<2x1x8xf32>
    %cst_41 = arith.constant dense<0xFF800000> : vector<2x1xf32>
    %94 = vector.multi_reduction <maximumf>, %93, %cst_41 [2] : vector<2x1x8xf32> to vector<2x1xf32>
    %95 = vector.shape_cast %94 : vector<2x1xf32> to vector<2x1x1xf32>
    %96 = vector.broadcast %95 : vector<2x1x1xf32> to vector<2x1x8xf32>
    %97 = arith.subf %93, %96 : vector<2x1x8xf32>
    %98 = math.exp %97 : vector<2x1x8xf32>
    %cst_42 = arith.constant dense<0.000000e+00> : vector<2x1xf32>
    %99 = vector.multi_reduction <add>, %98, %cst_42 [2] : vector<2x1x8xf32> to vector<2x1xf32>
    %100 = vector.shape_cast %99 : vector<2x1xf32> to vector<2x1x1xf32>
    %101 = vector.broadcast %100 : vector<2x1x1xf32> to vector<2x1x8xf32>
    %102 = arith.divf %98, %101 : vector<2x1x8xf32>
    "tpu.trace_start"() <{level = 10 : i32, message = "bqk,bkd->bqd"}> : () -> ()
    %cst_43 = arith.constant dense<0.000000e+00> : vector<2x1x8xf32>
    %103 = tpu.matmul %102, %90, %cst_43 {dimension_numbers = #tpu.dot_dimension_numbers<[2], [1], [1], [2], [0, 0, 0, 1, 1, 2], [0], [0]>} : vector<2x1x8xf32>, vector<2x8x8xf32>, vector<2x1x8xf32> -> vector<2x1x8xf32>
    "tpu.trace_stop"() : () -> ()
    %104 = vector.shape_cast %103 : vector<2x1x8xf32> to vector<2x8xf32>
    %105 = vector.extract_strided_slice %4 {offsets = [24, 0], sizes = [8, 32], strides = [1, 1]} : vector<32x32xf32> to vector<8x32xf32>
    %cst_44 = arith.constant dense<0.000000e+00> : vector<2x32xf32>
    %106 = tpu.matmul %104, %105, %cst_44 {dimension_numbers = #tpu.dot_dimension_numbers<[1], [0], [0], [1], [0, 0, 1, 1], [], []>} : vector<2x8xf32>, vector<8x32xf32>, vector<2x32xf32> -> vector<2x32xf32>
    %107 = arith.addf %86, %106 : vector<2x32xf32>
    %108 = vector.broadcast %8 : vector<1x32xf32> to vector<2x32xf32>
    %109 = arith.addf %107, %108 : vector<2x32xf32>
    %c0_45 = arith.constant 0 : index
    %c0_46 = arith.constant 0 : index
    %110 = vector.load %arg10[%c0_45, %c0_46] : memref<2x32xf32, #tpu.memory_space<vmem>>, vector<2x32xf32>
    tpu.vector_store %arg10[%c0_45, %c0_46], %109 {strides = array<i32>} : memref<2x32xf32, #tpu.memory_space<vmem>>, vector<2x32xf32>,
    return
  }
  func.func @transform_0(%arg0: i32) -> (i32, i32, i32) {
    %c0_i32 = arith.constant 0 : i32
    %c0_i32_0 = arith.constant 0 : i32
    %c0_i32_1 = arith.constant 0 : i32
    return %arg0, %c0_i32, %c0_i32_0 : i32, i32, i32
  }
  func.func @transform_1(%arg0: i32) -> (i32, i32) {
    %c0_i32 = arith.constant 0 : i32
    %c0_i32_0 = arith.constant 0 : i32
    %c0_i32_1 = arith.constant 0 : i32
    return %c0_i32, %c0_i32_0 : i32, i32
  }
  func.func @transform_2(%arg0: i32) -> (i32, i32) {
    %c0_i32 = arith.constant 0 : i32
    %c0_i32_0 = arith.constant 0 : i32
    %c0_i32_1 = arith.constant 0 : i32
    return %c0_i32, %c0_i32_0 : i32, i32
  }
  func.func @transform_3(%arg0: i32) -> (i32, i32) {
    %c0_i32 = arith.constant 0 : i32
    %c0_i32_0 = arith.constant 0 : i32
    %c0_i32_1 = arith.constant 0 : i32
    return %c0_i32, %c0_i32_0 : i32, i32
  }
  func.func @transform_4(%arg0: i32) -> (i32, i32) {
    %c0_i32 = arith.constant 0 : i32
    %c0_i32_0 = arith.constant 0 : i32
    %c0_i32_1 = arith.constant 0 : i32
    return %c0_i32, %c0_i32_0 : i32, i32
  }
  func.func @transform_5(%arg0: i32) -> (i32, i32) {
    %c0_i32 = arith.constant 0 : i32
    %c0_i32_0 = arith.constant 0 : i32
    %c0_i32_1 = arith.constant 0 : i32
    return %c0_i32, %c0_i32_0 : i32, i32
  }
  func.func @transform_6(%arg0: i32) -> (i32, i32) {
    %c0_i32 = arith.constant 0 : i32
    %c0_i32_0 = arith.constant 0 : i32
    %c0_i32_1 = arith.constant 0 : i32
    return %c0_i32, %c0_i32_0 : i32, i32
  }
  func.func @transform_7(%arg0: i32) -> (i32, i32) {
    %c0_i32 = arith.constant 0 : i32
    %c0_i32_0 = arith.constant 0 : i32
    %c0_i32_1 = arith.constant 0 : i32
    return %c0_i32, %c0_i32_0 : i32, i32
  }
  func.func @transform_8(%arg0: i32) -> (i32, i32) {
    %c0_i32 = arith.constant 0 : i32
    %c0_i32_0 = arith.constant 0 : i32
    %c0_i32_1 = arith.constant 0 : i32
    return %c0_i32, %c0_i32_0 : i32, i32
  }
  func.func @transform_9(%arg0: i32) -> (i32, i32) {
    %c0_i32 = arith.constant 0 : i32
    %c0_i32_0 = arith.constant 0 : i32
    return %arg0, %c0_i32 : i32, i32
  }
}

</mosaic_0001>

<bundles_post_ra>
// kernel: tpu_custom_call.1
= control target key start
LH: loop header
LB: loop body
LE: loop exit
PB: predicated region body
PF: predicated region fallthrough
CT: control target
= control target key end

     0   :  { %14 = vsyncpa [#allocation3], 0  ;;  %s1415_s0 = inlined_call_operand.hbm [shape: f32[2,8,32], index: 0, kind: input, shape index: {}]   ;;  %s1416_s1 = inlined_call_operand.hbm [shape: f32[32,32], index: 1, kind: input, shape index: {}]   ;;  %s1417_s2 = inlined_call_operand.hbm [shape: f32[32,32], index: 2, kind: input, shape index: {}]   ;;  %s1418_s3 = inlined_call_operand.hbm [shape: f32[32,32], index: 3, kind: input, shape index: {}]   ;;  %s1419_s4 = inlined_call_operand.hbm [shape: f32[32,32], index: 4, kind: input, shape index: {}]   ;;  %s1420_s5 = inlined_call_operand.vmem [shape: f32[1,32], index: 5, kind: input, shape index: {}]   ;;  %s1421_s6 = inlined_call_operand.vmem [shape: f32[1,32], index: 6, kind: input, shape index: {}]   ;;  %s1422_s7 = inlined_call_operand.vmem [shape: f32[1,32], index: 7, kind: input, shape index: {}]   ;;  %s1423_s8 = inlined_call_operand.vmem [shape: f32[1,32], index: 8, kind: input, shape index: {}]   ;;  %s1424_s9 = inlined_call_operand.hbm [shape: f32[2,32], index: 9, kind: output, shape index: {}]  }
   0x1   :  { %15 = vsyncpa [#allocation6], 0 }
   0x2   :  { %16 = vsyncpa [#allocation9], 0 }
   0x3   :  { %17 = vsyncpa [#allocation4], 0  ;;  %s35_s11 = sshll.u32 %s1416_s1, 4  ;;  %s1211_s12 = smov [#allocation5]   ;;  %s36_s11 = int_to_ptr.hbm [resolvable:$true] %s35_s11 }
   0x4   :  { %s37_s13 = sshll.u32 %s1211_s12, 4  ;;  %s61_s16 = sshll.u32 %s1418_s3, 4  ;;  %s38_s13 = int_to_ptr.vmem [resolvable:$true] %s37_s13  ;;  %s62_s16 = int_to_ptr.hbm [resolvable:$true] %s61_s16 }
   0x5   :  { %s1212_s17 = smov 128   ;;  %s1213_s18 = smov 8  }
   0x6   :  { %43 = dma.hbm_to_vmem [thread:$0]  %s36_s11, 512, %s38_s13, [#allocation6], %s1212_s17, %s1212_s17, %s1213_s18  }
   0x7   :  { %s1214_s19 = smov [#allocation8]   ;;  %s22_s23 = sshll.u32 %s1415_s0, 4  ;;  %s23_s23 = int_to_ptr.hbm [resolvable:$true] %s22_s23 }
   0x8   :  { %s63_s20 = sshll.u32 %s1214_s19, 4  ;;  %s48_s25 = sshll.u32 %s1417_s2, 4  ;;  %s64_s20 = int_to_ptr.vmem [resolvable:$true] %s63_s20  ;;  %s49_s25 = int_to_ptr.hbm [resolvable:$true] %s48_s25 }
   0x9   :  { %69 = dma.hbm_to_vmem [thread:$0]  %s62_s16, 512, %s64_s20, [#allocation9], %s1212_s17, %s1212_s17, %s1213_s18  }
   0xa   :  { %s1215_s26 = smov [#allocation2]   ;;  %s1216_s3 = smov [#allocation7]  }
   0xb   :  { %s24_s27 = sshll.u32 %s1215_s26, 4  ;;  %s50_s28 = sshll.u32 %s1216_s3, 4  ;;  %s25_s27 = int_to_ptr.vmem [resolvable:$true] %s24_s27  ;;  %s51_s28 = int_to_ptr.vmem [resolvable:$true] %s50_s28 }
   0xc   :  { %30 = dma.hbm_to_vmem [thread:$0]  %s23_s23, 256, %s25_s27, [#allocation3], %s1212_s17, %s1212_s17, %s1213_s18  }
   0xd   :  { %s74_s10 = sshll.u32 %s1419_s4, 4  ;;  %s1217_s0 = smov [#allocation10]   ;;  %s75_s10 = int_to_ptr.hbm [resolvable:$true] %s74_s10 }
   0xe   :  { %56 = dma.hbm_to_vmem [thread:$0]  %s49_s25, 512, %s51_s28, [#allocation6], %s1212_s17, %s1212_s17, %s1213_s18  }
   0xf   :  { %s76_s11 = sshll.u32 %s1217_s0, 4  ;;  %s77_s11 = int_to_ptr.vmem [resolvable:$true] %s76_s11 }
  0x10   :  { %82 = dma.hbm_to_vmem [thread:$0]  %s75_s10, 512, %s77_s11, [#allocation9], %s1212_s17, %s1212_s17, %s1213_s18  }
  0x11   :  { %1203 = dma.done.wait [#allocation3], 256  }
  0x12   :  { %1204 = vsyncadd [#allocation3], 4294967040 }
  0x13   :  { %1205 = dma.done.wait [#allocation6], 1024  }
  0x14   :  { %1206 = vsyncadd [#allocation6], 4294966272 }
  0x15   :  { %1207 = dma.done.wait [#allocation9], 1024  }
  0x16   :  { %1208 = vsyncadd [#allocation9], 4294966272  ;;  %v120_v0 = vld [vmem:[#allocation7 + $0x18] sm:$0xff]  ;;  %v119_v2 = vld [vmem:[#allocation7 + $0x10] sm:$0xff]  ;;  %vm196_vm0 = vcmask 1041409   ;;  %vm136_vm1 = vcmask 261120  }
  0x17   :  { %v116_v1 = vld [vmem:[#allocation5 + $0x18] sm:$0xff]  ;;  %155 = vmatpush.msra.mxu0 %v120_v0  ;;  %v115_v3 = vld [vmem:[#allocation5 + $0x10] sm:$0xff]  ;;  %v118_v4 = vld [vmem:[#allocation7 + $0x8] sm:$0xff]  ;;  %vm222_vm2 = vcmask 64512   ;;  %s1218_s12 = smov 120   ;;  %vm275_vm3 = vcmask 57344  }
  0x18   :  { %212 = vmatpush.msra.mxu2 %v116_v1  ;;  %v114_v5 = vld [vmem:[#allocation5 + $0x8] sm:$0xff]  ;;  %v117_v6 = vld [vmem:[#allocation7] sm:$0xff]  ;;  %v111_v7 = vld [vmem:[#allocation2] sm:$0xff]  ;;  %s1220_s15 = smov 104   ;;  %s1221_s18 = smov [#allocation11]  }
  0x19   :  { %156 = vmatpush.msra.mxu0 %v119_v2  ;;  %v112_v8 = vld [vmem:[#allocation2 + $0x8] sm:$0xff]  ;;  %v113_v9 = vld [vmem:[#allocation5] sm:$0xff]  ;;  %v123_v13 = vld [vmem:[#allocation8 + $0x10] sm:$0xff]  ;;  %s965_s19 = sshll.u32 %s1221_s18, 4  ;;  %s967_s22 = sshll.u32 %s1424_s9, 4  ;;  %s966_s19 = int_to_ptr.vmem [resolvable:$true] %s965_s19  ;;  %s968_s22 = int_to_ptr.hbm [resolvable:$true] %s967_s22 }
  0x1a   :  { %213 = vmatpush.msra.mxu2 %v115_v3  ;;  %v195_v10 = vrot.slane %v112_v8, 7  ;;  %v124_v12 = vld [vmem:[#allocation8 + $0x18] sm:$0xff]  ;;  %v122_v14 = vld [vmem:[#allocation8 + $0x8] sm:$0xff]  ;;  %v121_v15 = vld [vmem:[#allocation8] sm:$0xff] }
  0x1b   :  { %157 = vmatpush.msra.mxu0 %v118_v4  ;;  %181 = vmatpush.msra.mxu1 %v124_v12  ;;  %v1023_v16 = vld [vmem:[%s1421_s6] ss:$0 sm:$0xff] }
  0x1c   :  { %214 = vmatpush.msra.mxu2 %v114_v5  ;;  %v197_v11 = vsel %vm196_vm0, %v195_v10, %v111_v7  ;;  %v1024_v19 = vld [vmem:[%s1420_s5] ss:$0 sm:$0xff] }
  0x1d   :  { %158 = vmatpush.msra.mxu0 %v117_v6  ;;  %182 = vmatpush.msra.mxu1 %v123_v13  ;;  %v1025_v28 = vld [vmem:[%s1422_s7] ss:$0 sm:$0xff]  ;;  %s1219_s7 = smov 112  }
  0x1e   :  { %215 = vmatpush.msra.mxu2 %v113_v9  ;;  %979 = vmatmul.msk.f32.vlgmr.msra.gmra.mxu0 %vm136_vm1, %v111_v7 }
  0x1f   :  { %983 = vmatmul.msk.f32.vlgmr.msra.gmra.mxu2 %vm136_vm1, %v197_v11  ;;  %183 = vmatpush.msra.mxu1 %v122_v14 }
  0x21   :  { %184 = vmatpush.msra.mxu1 %v121_v15 }
  0x22   :  { %981 = vmatmul.msk.f32.vlgmr.msra.gmra.mxu1 %vm136_vm1, %v111_v7 }
  0x26   :  { %980 = vmatmul.msk.f32.gmra.mxu0 %vm136_vm1, %v112_v8 }
  0x2a   :  { %982 = vmatmul.msk.f32.gmra.mxu1 %vm136_vm1, %v112_v8 }
  0x9b   :  { %v160_v17 = vpop.f32.mrf.mxu0 }
  0x9c   :  { %v1295_v18 = vadd.f32 %v1023_v16, %v160_v17 }
  0x9e   :  { %373 = vrot.lane.b32.xlu0 %v1295_v18, %s1218_s12  ;;  %984 = vmatpush.xpose.msk.msra.mxu3 %vm222_vm2, %v1295_v18 }
  0x9f   :  { %v186_v29 = vpop.f32.mrf.mxu1 }
  0xa0   :  { %v1325_v30 = vadd.f32 %v1025_v28, %v186_v29 }
  0xa2   :  { %v217_v20 = vpop.f32.mrf.mxu2  ;;  %342 = vmatpush.msrb.mxu2 %v1325_v30 }
  0xa3   :  { %v218_v21 = vadd.f32 %v1024_v19, %v217_v20  ;;  %v163_v22 = vpop.f32.mrf.mxu0 }
  0xa4   :  { %v1305_v23 = vadd.f32 %v1023_v16, %v163_v22 }
  0xa5   :  { %985 = vmatmul.msk.f32.vlgmr.msra.gmra.mxu3 %vm222_vm2, %v218_v21  ;;  %v1308_v24 = vperm.slane %v218_v21, 0  ;;  %v221_v25 = vrot.slane %v218_v21, 1 }
  0xa6   :  { %402 = vrot.lane.b32.xlu1 %v1305_v23, %s1218_s12  ;;  %986 = vmatpush.xpose.msk.msrb.mxu3 %vm222_vm2, %v1305_v23 }
  0xa7   :  { %371 = vrot.lane.b32.xlu0 %v1308_v24, %s1218_s12  ;;  %v1317_v26 = vperm.slane %v221_v25, 0  ;;  %v189_v33 = vpop.f32.mrf.mxu1 }
  0xa8   :  { %v1330_v34 = vadd.f32 %v1025_v28, %v189_v33 }
  0xaa   :  { %365 = vmatpush.msra.mxu3 %v1330_v34 }
  0xad   :  { %987 = vmatmul.msk.f32.vlgmr.msrb.gmra.mxu3 %vm222_vm2, %v221_v25 }
  0xae   :  { %400 = vrot.lane.b32.xlu1 %v1317_v26, %s1218_s12 }
 0x110   :  { %v374_v27 = vpop.permute.xlu0 %373 }
 0x111   :  { %990 = vmatpush.xpose.msk.msrb.mxu0 %vm222_vm2, %v374_v27 }
 0x118   :  { %v403_v31 = vpop.permute.xlu1 %402 }
 0x119   :  { %v372_v32 = vpop.permute.xlu0 %371  ;;  %992 = vmatpush.xpose.msk.msrb.mxu1 %vm222_vm2, %v403_v31 }
 0x11a   :  { %991 = vmatmul.msk.f32.vlgmr.msrb.gmra.mxu0 %vm222_vm2, %v372_v32 }
 0x120   :  { %v401_v35 = vpop.permute.xlu1 %400 }
 0x121   :  { %993 = vmatmul.msk.f32.vlgmr.msrb.gmra.mxu1 %vm222_vm2, %v401_v35 }
 0x128   :  { %v245_v36 = vpop.f32.mrf.mxu3 }
 0x129   :  { %v273_v37 = vmul.f32 0.35355338, %v245_v36 }
 0x12b   :  { %v276_v38 = vsel %vm275_vm3, %v273_v37, -inf }
 0x12c   :  { %277 = vmax.xlane.f32.xlu2 %v276_v38 }
 0x130   :  { %v270_v50 = vpop.f32.mrf.mxu3 }
 0x131   :  { %v274_v51 = vmul.f32 0.35355338, %v270_v50 }
 0x133   :  { %v279_v52 = vsel %vm275_vm3, %v274_v51, -inf }
 0x197   :  { %v396_v39 = vpop.f32.mrf.mxu0 }
 0x198   :  { %v428_v40 = vmul.f32 0.35355338, %v396_v39 }
 0x19a   :  { %v430_v41 = vsel %vm275_vm3, %v428_v40, -inf }
 0x19b   :  { %431 = vmax.xlane.f32.xlu2 %v430_v41 }
 0x19e   :  { %v425_v47 = vpop.f32.mrf.mxu1 }
 0x19f   :  { %v278_v42 = vpop.xlane.xlu2 %277  ;;  %v429_v48 = vmul.f32 0.35355338, %v425_v47 }
 0x1a0   :  { %v282_v43 = vsub.f32 %v273_v37, %v278_v42 }
 0x1a1   :  { %v433_v49 = vsel %vm275_vm3, %v429_v48, -inf }
 0x1a2   :  { %v284_v44 = vmul.f32 1.442695, %v282_v43 }
 0x1a4   :  { %1027 = vpow2.f32 %v284_v44 }
 0x1aa   :  { %v1028_v45 = vpop.eup %1027 }
 0x1ab   :  { %v288_v46 = vsel %vm275_vm3, %v1028_v45, 0.0 }
 0x1ac   :  { %289 = vadd.xlane.f32.xlu0 %v288_v46 }
 0x1b3   :  { %479 = vrot.lane.b32.xlu2 %v1325_v30, %s1218_s12 }
 0x1b4   :  { %434 = vmax.xlane.f32.xlu0 %v433_v49 }
 0x1bb   :  { %586 = vrot.lane.b32.xlu2 %v1295_v18, %s1219_s7 }
 0x1c3   :  { %584 = vrot.lane.b32.xlu2 %v1308_v24, %s1219_s7 }
 0x1ec   :  { %280 = vmax.xlane.f32.xlu2 %v279_v52 }
 0x20e   :  { %v432_v53 = vpop.xlane.xlu2 %431 }
 0x20f   :  { %v436_v54 = vsub.f32 %v428_v40, %v432_v53  ;;  %v126_v40 = vld [vmem:[#allocation10 + $0x8] sm:$0xff] }
 0x210   :  { %553 = vmatpush.msra.mxu0 %v126_v40 }
 0x211   :  { %v438_v55 = vmul.f32 1.442695, %v436_v54 }
 0x213   :  { %1029 = vpow2.f32 %v438_v55 }
 0x216   :  { %v480_v56 = vpop.permute.xlu2 %479 }
 0x217   :  { %500 = vmatpush.msra.mxu2 %v480_v56 }
 0x219   :  { %v1030_v57 = vpop.eup %1029 }
 0x21a   :  { %v442_v58 = vsel %vm275_vm3, %v1030_v57, 0.0 }
 0x21b   :  { %443 = vadd.xlane.f32.xlu1 %v442_v58 }
 0x21e   :  { %v587_v11 = vpop.permute.xlu2 %586 }
 0x21f   :  { %v290_v59 = vpop.xlane.xlu0 %289 }
 0x220   :  { %1031 = vrcp.f32 %v290_v59  ;;  %v305_v1 = vand.u32 2147483648, %v290_v59  ;;  %v303_v4 = vand.u32 2147483647, %v290_v59  ;;  %vm299_vm5 = vweird.f32 %v290_v59 }
 0x222   :  { %v306_v6 = vor.u32 1.1754944e-38, %v305_v1  ;;  %vm304_vm7 = vcmp.eq.f32.partialorder %v303_v4, 8.507059e+37 }
 0x226   :  { %v1032_v60 = vpop.eup %1031  ;;  %v585_v13 = vpop.permute.xlu2 %584 }
 0x227   :  { %v295_v61 = vmul.f32 %v1032_v60, %v290_v59  ;;  %v435_v62 = vpop.xlane.xlu0 %434  ;;  %vm300_vm4 = vweird.f32 %v1032_v60 }
 0x228   :  { %v437_v63 = vsub.f32 %v429_v48, %v435_v62  ;;  %vm301_vm6 = vmor %vm299_vm5, %vm300_vm4 }
 0x229   :  { %v296_v0 = vsub.f32 1.0, %v295_v61 }
 0x22a   :  { %v440_v2 = vmul.f32 1.442695, %v437_v63 }
 0x22b   :  { %v297_v3 = vmul.f32 %v1032_v60, %v296_v0 }
 0x22c   :  { %1033 = vpow2.f32 %v440_v2 }
 0x22d   :  { %v298_v5 = vadd.f32 %v1032_v60, %v297_v3 }
 0x22f   :  { %v302_v7 = vsel %vm301_vm6, %v1032_v60, %v298_v5 }
 0x230   :  { %v307_v8 = vsel %vm304_vm7, %v306_v6, %v302_v7  ;;  %v125_v7 = vld [vmem:[#allocation10] sm:$0xff] }
 0x231   :  { %v308_v9 = vmul.f32 %v1028_v45, %v307_v8  ;;  %579 = vmatpush.msra.mxu1 %v125_v7 }
 0x232   :  { %v1346_v10 = vpop.eup %1033 }
 0x233   :  { %988 = vmatmul.msk.f32.vlgmr.msrb.gmra.mxu2 %vm222_vm2, %v308_v9  ;;  %v445_v12 = vsel %vm275_vm3, %v1346_v10, 0.0 }
 0x234   :  { %998 = vmatpush.xpose.msk.msrb.mxu2 %vm222_vm2, %v587_v11  ;;  %446 = vadd.xlane.f32.xlu0 %v445_v12 }
 0x248   :  { %614 = vrot.lane.b32.xlu0 %v1305_v23, %s1219_s7 }
 0x25f   :  { %v281_v14 = vpop.xlane.xlu2 %280 }
 0x260   :  { %v283_v15 = vsub.f32 %v274_v51, %v281_v14 }
 0x262   :  { %v286_v16 = vmul.f32 1.442695, %v283_v15 }
 0x264   :  { %1035 = vpow2.f32 %v286_v16 }
 0x26a   :  { %v1036_v17 = vpop.eup %1035 }
 0x26b   :  { %v291_v19 = vsel %vm275_vm3, %v1036_v17, 0.0 }
 0x26c   :  { %292 = vadd.xlane.f32.xlu1 %v291_v19 }
 0x285   :  { %506 = vrot.lane.b32.xlu1 %v1330_v34, %s1218_s12 }
 0x28d   :  { %612 = vrot.lane.b32.xlu1 %v1317_v26, %s1219_s7 }
 0x28e   :  { %v444_v20 = vpop.xlane.xlu1 %443 }
 0x28f   :  { %1037 = vrcp.f32 %v444_v20  ;;  %v459_v27 = vand.u32 2147483648, %v444_v20  ;;  %v457_v29 = vand.u32 2147483647, %v444_v20  ;;  %vm453_vm9 = vweird.f32 %v444_v20 }
 0x291   :  { %v460_v32 = vor.u32 1.1754944e-38, %v459_v27  ;;  %vm458_vm11 = vcmp.eq.f32.partialorder %v457_v29, 8.507059e+37 }
 0x295   :  { %v1038_v21 = vpop.eup %1037  ;;  %690 = vrot.lane.b32.xlu1 %v1325_v30, %s1219_s7 }
 0x296   :  { %v449_v22 = vmul.f32 %v1038_v21, %v444_v20  ;;  %vm454_vm8 = vweird.f32 %v1038_v21 }
 0x297   :  { %vm455_vm10 = vmor %vm453_vm9, %vm454_vm8 }
 0x298   :  { %v450_v25 = vsub.f32 1.0, %v449_v22 }
 0x29a   :  { %v451_v28 = vmul.f32 %v1038_v21, %v450_v25 }
 0x29c   :  { %v452_v31 = vadd.f32 %v1038_v21, %v451_v28 }
 0x29d   :  { %771 = vrot.lane.b32.xlu1 %v1295_v18, %s1220_s15 }
 0x29e   :  { %v456_v33 = vsel %vm455_vm10, %v1038_v21, %v452_v31 }
 0x29f   :  { %v461_v35 = vsel %vm458_vm11, %v460_v32, %v456_v33 }
 0x2a0   :  { %v462_v36 = vmul.f32 %v1030_v57, %v461_v35 }
 0x2a2   :  { %994 = vmatmul.msk.f32.vlgmr.msra.gmra.mxu2 %vm222_vm2, %v462_v36 }
 0x2a5   :  { %797 = vrot.lane.b32.xlu1 %v1317_v26, %s1220_s15 }
 0x2a7   :  { %v447_v37 = vpop.xlane.xlu0 %446 }
 0x2a8   :  { %1039 = vrcp.f32 %v447_v37  ;;  %v474_v51 = vand.u32 2147483648, %v447_v37  ;;  %vm468_vm4 = vweird.f32 %v447_v37  ;;  %v472_v53 = vand.u32 2147483647, %v447_v37 }
 0x2aa   :  { %999 = vmatmul.msk.f32.vlgmr.msrb.gmra.mxu2 %vm222_vm2, %v585_v13  ;;  %v475_v56 = vor.u32 1.1754944e-38, %v474_v51  ;;  %vm473_vm6 = vcmp.eq.f32.partialorder %v472_v53, 8.507059e+37 }
 0x2ad   :  { %769 = vrot.lane.b32.xlu1 %v1308_v24, %s1220_s15 }
 0x2ae   :  { %v1040_v39 = vpop.eup %1039 }
 0x2af   :  { %v464_v18 = vmul.f32 %v1040_v39, %v447_v37  ;;  %vm469_vm15 = vweird.f32 %v1040_v39 }
 0x2b0   :  { %vm470_vm5 = vmor %vm468_vm4, %vm469_vm15 }
 0x2b1   :  { %v465_v42 = vsub.f32 1.0, %v464_v18 }
 0x2b3   :  { %v466_v46 = vmul.f32 %v1040_v39, %v465_v42 }
 0x2b5   :  { %v467_v49 = vadd.f32 %v1040_v39, %v466_v46 }
 0x2b6   :  { %v344_v1 = vpop.f32.mrf.mxu2 }
 0x2b7   :  { %v471_v55 = vsel %vm470_vm5, %v1040_v39, %v467_v49 }
 0x2b8   :  { %v476_v57 = vsel %vm473_vm6, %v475_v56, %v471_v55 }
 0x2b9   :  { %v477_v60 = vmul.f32 %v1346_v10, %v476_v57 }
 0x2ba   :  { %v615_v59 = vpop.permute.xlu0 %614 }
 0x2df   :  { %v293_v38 = vpop.xlane.xlu1 %292 }
 0x2e0   :  { %1041 = vrcp.f32 %v293_v38  ;;  %v320_v45 = vand.u32 2147483648, %v293_v38  ;;  %v318_v47 = vand.u32 2147483647, %v293_v38  ;;  %vm314_vm13 = vweird.f32 %v293_v38 }
 0x2e2   :  { %v321_v24 = vor.u32 1.1754944e-38, %v320_v45  ;;  %vm319_vm1 = vcmp.eq.f32.partialorder %v318_v47, 8.507059e+37 }
 0x2e6   :  { %v1042_v41 = vpop.eup %1041 }
 0x2e7   :  { %v310_v43 = vmul.f32 %v1042_v41, %v293_v38  ;;  %vm315_vm12 = vweird.f32 %v1042_v41 }
 0x2e8   :  { %vm316_vm14 = vmor %vm314_vm13, %vm315_vm12 }
 0x2e9   :  { %v311_v44 = vsub.f32 1.0, %v310_v43 }
 0x2eb   :  { %v312_v26 = vmul.f32 %v1042_v41, %v311_v44 }
 0x2ed   :  { %v313_v48 = vadd.f32 %v1042_v41, %v312_v26 }
 0x2ef   :  { %v317_v50 = vsel %vm316_vm14, %v1042_v41, %v313_v48 }
 0x2f0   :  { %v322_v52 = vsel %vm319_vm1, %v321_v24, %v317_v50 }
 0x2f1   :  { %v323_v54 = vmul.f32 %v1036_v17, %v322_v52 }
 0x2f3   :  { %989 = vmatmul.msk.f32.vlgmr.msra.gmra.mxu3 %vm222_vm2, %v323_v54 }
 0x2f7   :  { %v507_v58 = vpop.permute.xlu1 %506 }
 0x2f8   :  { %527 = vmatpush.msrb.mxu3 %v507_v58 }
 0x2fa   :  { %1000 = vmatpush.xpose.msk.msra.mxu3 %vm222_vm2, %v615_v59 }
 0x2fb   :  { %995 = vmatmul.msk.f32.vlgmr.msrb.gmra.mxu3 %vm222_vm2, %v477_v60 }
 0x2ff   :  { %v613_v61 = vpop.permute.xlu1 %612 }
 0x303   :  { %1001 = vmatmul.msk.f32.vlgmr.msra.gmra.mxu3 %vm222_vm2, %v613_v61 }
 0x307   :  { %v691_v62 = vpop.permute.xlu1 %690 }
 0x308   :  { %711 = vmatpush.msrb.mxu0 %v691_v62 }
 0x30f   :  { %v772_v63 = vpop.permute.xlu1 %771 }
 0x310   :  { %1005 = vmatpush.xpose.msk.msrb.mxu3 %vm222_vm2, %v772_v63 }
 0x317   :  { %v798_v0 = vpop.permute.xlu1 %797 }
 0x31f   :  { %v770_v2 = vpop.permute.xlu1 %769 }
 0x320   :  { %1006 = vmatmul.msk.f32.vlgmr.msrb.gmra.mxu3 %vm222_vm2, %v770_v2 }
 0x325   :  { %v502_v3 = vpop.f32.mrf.mxu2 }
 0x32d   :  { %v609_v4 = vpop.f32.mrf.mxu2 }
 0x32e   :  { %v640_v5 = vmul.f32 0.35355338, %v609_v4 }
 0x330   :  { %v642_v6 = vsel %vm275_vm3, %v640_v5, -inf }
 0x331   :  { %643 = vmax.xlane.f32.xlu0 %v642_v6 }
 0x345   :  { %716 = vrot.lane.b32.xlu0 %v1330_v34, %s1219_s7 }
 0x376   :  { %v367_v8 = vpop.f32.mrf.mxu3 }
 0x377   :  { %v560_v9 = vrot.slane %v367_v8, 7 }
 0x379   :  { %v561_v10 = vsel %vm196_vm0, %v560_v9, %v344_v1 }
 0x37a   :  { %997 = vmatmul.msk.f32.vlgmr.msra.gmra.mxu1 %vm222_vm2, %v561_v10 }
 0x37e   :  { %v529_v11 = vpop.f32.mrf.mxu3 }
 0x37f   :  { %v534_v12 = vrot.slane %v529_v11, 7 }
 0x381   :  { %v535_v13 = vsel %vm196_vm0, %v534_v12, %v502_v3 }
 0x382   :  { %996 = vmatmul.msk.f32.vlgmr.msra.gmra.mxu0 %vm222_vm2, %v535_v13 }
 0x386   :  { %v637_v21 = vpop.f32.mrf.mxu3 }
 0x387   :  { %v641_v22 = vmul.f32 0.35355338, %v637_v21 }
 0x389   :  { %v645_v25 = vsel %vm275_vm3, %v641_v22, -inf }
 0x3a3   :  { %v794_v27 = vpop.f32.mrf.mxu3 }
 0x3a4   :  { %v644_v14 = vpop.xlane.xlu0 %643  ;;  %v825_v28 = vmul.f32 0.35355338, %v794_v27 }
 0x3a5   :  { %v648_v15 = vsub.f32 %v640_v5, %v644_v14 }
 0x3a6   :  { %v827_v29 = vsel %vm275_vm3, %v825_v28, -inf }
 0x3a7   :  { %v650_v16 = vmul.f32 1.442695, %v648_v15 }
 0x3a9   :  { %1043 = vpow2.f32 %v650_v16 }
 0x3af   :  { %v1044_v17 = vpop.eup %1043 }
 0x3b0   :  { %v654_v19 = vsel %vm275_vm3, %v1044_v17, 0.0 }
 0x3b1   :  { %655 = vadd.xlane.f32.xlu2 %v654_v19 }
 0x3b7   :  { %v717_v20 = vpop.permute.xlu0 %716 }
 0x3b8   :  { %737 = vmatpush.msrb.mxu1 %v717_v20 }
 0x3c9   :  { %799 = vrot.lane.b32.xlu2 %v1305_v23, %s1220_s15 }
 0x3f2   :  { %646 = vmax.xlane.f32.xlu2 %v645_v25 }
 0x3f7   :  { %v581_v25 = vpop.f32.mrf.mxu1 }
 0x3fa   :  { %828 = vmax.xlane.f32.xlu2 %v827_v29 }
 0x3ff   :  { %v1395_v51 = vpop.f32.mrf.mxu0 }
 0x424   :  { %v656_v31 = vpop.xlane.xlu2 %655 }
 0x425   :  { %1045 = vrcp.f32 %v656_v31  ;;  %v671_v37 = vand.u32 2147483648, %v656_v31  ;;  %v669_v38 = vand.u32 2147483647, %v656_v31  ;;  %vm665_vm8 = vweird.f32 %v656_v31 }
 0x427   :  { %v672_v18 = vor.u32 1.1754944e-38, %v671_v37  ;;  %vm670_vm10 = vcmp.eq.f32.partialorder %v669_v38, 8.507059e+37 }
 0x42b   :  { %v1046_v32 = vpop.eup %1045 }
 0x42c   :  { %v661_v33 = vmul.f32 %v1046_v32, %v656_v31  ;;  %v800_v35 = vpop.permute.xlu2 %799  ;;  %vm666_vm7 = vweird.f32 %v1046_v32 }
 0x42d   :  { %1007 = vmatpush.xpose.msk.msra.mxu0 %vm222_vm2, %v800_v35  ;;  %vm667_vm9 = vmor %vm665_vm8, %vm666_vm7 }
 0x42e   :  { %v662_v36 = vsub.f32 1.0, %v661_v33 }
 0x430   :  { %v663_v23 = vmul.f32 %v1046_v32, %v662_v36 }
 0x432   :  { %v664_v39 = vadd.f32 %v1046_v32, %v663_v23 }
 0x434   :  { %v668_v40 = vsel %vm667_vm9, %v1046_v32, %v664_v39  ;;  %vm958_vm9 = vcmask 254976  }
 0x435   :  { %v673_v41 = vsel %vm670_vm10, %v672_v18, %v668_v40 }
 0x436   :  { %v674_v42 = vmul.f32 %v1044_v17, %v673_v41 }
 0x438   :  { %1002 = vmatmul.msk.f32.vlgmr.msrb.gmra.mxu0 %vm222_vm2, %v674_v42  ;;  %v128_v42 = vld [vmem:[#allocation10 + $0x18] sm:$0xff] }
 0x439   :  { %948 = vmatpush.msra.mxu3 %v128_v42 }
 0x440   :  { %1008 = vmatmul.msk.f32.vlgmr.msra.gmra.mxu0 %vm222_vm2, %v798_v0 }
 0x465   :  { %v647_v43 = vpop.xlane.xlu2 %646 }
 0x466   :  { %v649_v44 = vsub.f32 %v641_v22, %v647_v43  ;;  %v127_v22 = vld [vmem:[#allocation10 + $0x10] sm:$0xff] }
 0x467   :  { %763 = vmatpush.msra.mxu2 %v127_v22 }
 0x468   :  { %v652_v45 = vmul.f32 1.442695, %v649_v44 }
 0x46a   :  { %1047 = vpow2.f32 %v652_v45 }
 0x46d   :  { %v829_v46 = vpop.xlane.xlu2 %828 }
 0x46e   :  { %v833_v26 = vsub.f32 %v825_v28, %v829_v46 }
 0x470   :  { %v1048_v47 = vpop.eup %1047  ;;  %v835_v48 = vmul.f32 1.442695, %v833_v26 }
 0x471   :  { %v657_v24 = vsel %vm275_vm3, %v1048_v47, 0.0 }
 0x472   :  { %1049 = vpow2.f32 %v835_v48  ;;  %658 = vadd.xlane.f32.xlu1 %v657_v24  ;;  %v1026_v24 = vld [vmem:[%s1423_s8] ss:$0 sm:$0xff] }
 0x478   :  { %v1050_v49 = vpop.eup %1049 }
 0x479   :  { %v839_v50 = vsel %vm275_vm3, %v1050_v49, 0.0 }
 0x47a   :  { %840 = vadd.xlane.f32.xlu2 %v839_v50 }
 0x492   :  { %875 = vrot.lane.b32.xlu2 %v1325_v30, %s1220_s15 }
 0x4b5   :  { %v713_v52 = vpop.f32.mrf.mxu0 }
 0x4bd   :  { %v822_v53 = vpop.f32.mrf.mxu0 }
 0x4be   :  { %v826_v54 = vmul.f32 0.35355338, %v822_v53 }
 0x4c0   :  { %v830_v55 = vsel %vm275_vm3, %v826_v54, -inf }
 0x4c1   :  { %831 = vmax.xlane.f32.xlu0 %v830_v55 }
 0x4e5   :  { %v659_v56 = vpop.xlane.xlu1 %658 }
 0x4e6   :  { %1051 = vrcp.f32 %v659_v56  ;;  %v686_v61 = vand.u32 2147483648, %v659_v56  ;;  %v684_v63 = vand.u32 2147483647, %v659_v56  ;;  %vm680_vm12 = vweird.f32 %v659_v56 }
 0x4e8   :  { %v687_v1 = vor.u32 1.1754944e-38, %v686_v61  ;;  %vm685_vm14 = vcmp.eq.f32.partialorder %v684_v63, 8.507059e+37 }
 0x4ec   :  { %v1052_v57 = vpop.eup %1051 }
 0x4ed   :  { %v676_v58 = vmul.f32 %v1052_v57, %v659_v56  ;;  %v841_v59 = vpop.xlane.xlu2 %840  ;;  %vm681_vm11 = vweird.f32 %v1052_v57 }
 0x4ee   :  { %1053 = vrcp.f32 %v841_v59  ;;  %vm682_vm13 = vmor %vm680_vm12, %vm681_vm11  ;;  %v856_v8 = vand.u32 2147483648, %v841_v59  ;;  %v854_v10 = vand.u32 2147483647, %v841_v59  ;;  %vm850_vm1 = vweird.f32 %v841_v59 }
 0x4ef   :  { %v677_v60 = vsub.f32 1.0, %v676_v58 }
 0x4f0   :  { %v857_v12 = vor.u32 1.1754944e-38, %v856_v8  ;;  %vm855_vm5 = vcmp.eq.f32.partialorder %v854_v10, 8.507059e+37 }
 0x4f1   :  { %v678_v62 = vmul.f32 %v1052_v57, %v677_v60 }
 0x4f3   :  { %v679_v30 = vadd.f32 %v1052_v57, %v678_v62 }
 0x4f4   :  { %v1054_v0 = vpop.eup %1053 }
 0x4f5   :  { %v683_v2 = vsel %vm682_vm13, %v1052_v57, %v679_v30  ;;  %v846_v3 = vmul.f32 %v1054_v0, %v841_v59  ;;  %v876_v4 = vpop.permute.xlu2 %875  ;;  %vm851_vm15 = vweird.f32 %v1054_v0 }
 0x4f6   :  { %v688_v5 = vsel %vm685_vm14, %v687_v1, %v683_v2  ;;  %896 = vmatpush.msra.mxu1 %v876_v4  ;;  %vm852_vm4 = vmor %vm850_vm1, %vm851_vm15 }
 0x4f7   :  { %v847_v6 = vsub.f32 1.0, %v846_v3  ;;  %v689_v7 = vmul.f32 %v1048_v47, %v688_v5  ;;  %v582_v47 = vadd.f32 %v581_v25, %v1395_v51 }
 0x4f9   :  { %v848_v9 = vmul.f32 %v1054_v0, %v847_v6  ;;  %1003 = vmatmul.msk.f32.vlgmr.msrb.gmra.mxu1 %vm222_vm2, %v689_v7 }
 0x4fb   :  { %v849_v11 = vadd.f32 %v1054_v0, %v848_v9 }
 0x4fd   :  { %v853_v13 = vsel %vm852_vm4, %v1054_v0, %v849_v11 }
 0x4fe   :  { %v858_v14 = vsel %vm855_vm5, %v857_v12, %v853_v13 }
 0x4ff   :  { %v859_v15 = vmul.f32 %v1050_v49, %v858_v14 }
 0x501   :  { %1009 = vmatmul.msk.f32.vlgmr.msra.gmra.mxu1 %vm222_vm2, %v859_v15 }
 0x534   :  { %v832_v16 = vpop.xlane.xlu0 %831 }
 0x535   :  { %v834_v17 = vsub.f32 %v826_v54, %v832_v16 }
 0x537   :  { %v837_v19 = vmul.f32 1.442695, %v834_v17 }
 0x539   :  { %1055 = vpow2.f32 %v837_v19 }
 0x53f   :  { %v1056_v20 = vpop.eup %1055 }
 0x540   :  { %v842_v21 = vsel %vm275_vm3, %v1056_v20, 0.0 }
 0x541   :  { %843 = vadd.xlane.f32.xlu1 %v842_v21 }
 0x55a   :  { %901 = vrot.lane.b32.xlu1 %v1330_v34, %s1220_s15 }
 0x576   :  { %v739_v27 = vpop.f32.mrf.mxu1 }
 0x577   :  { %v744_v28 = vrot.slane %v739_v27, 7 }
 0x579   :  { %v745_v29 = vsel %vm196_vm0, %v744_v28, %v713_v52 }
 0x57a   :  { %1004 = vmatmul.msk.f32.vlgmr.msra.gmra.mxu2 %vm222_vm2, %v745_v29 }
 0x57e   :  { %v898_v46 = vpop.f32.mrf.mxu1 }
 0x5b4   :  { %v844_v31 = vpop.xlane.xlu1 %843 }
 0x5b5   :  { %1057 = vrcp.f32 %v844_v31  ;;  %v871_v23 = vand.u32 2147483648, %v844_v31  ;;  %vm865_vm6 = vweird.f32 %v844_v31  ;;  %v869_v38 = vand.u32 2147483647, %v844_v31 }
 0x5b7   :  { %v872_v39 = vor.u32 1.1754944e-38, %v871_v23  ;;  %vm870_vm8 = vcmp.eq.f32.partialorder %v869_v38, 8.507059e+37 }
 0x5bb   :  { %v1058_v32 = vpop.eup %1057 }
 0x5bc   :  { %v861_v33 = vmul.f32 %v1058_v32, %v844_v31  ;;  %vm866_vm3 = vweird.f32 %v1058_v32 }
 0x5bd   :  { %vm867_vm7 = vmor %vm865_vm6, %vm866_vm3 }
 0x5be   :  { %v862_v35 = vsub.f32 1.0, %v861_v33 }
 0x5c0   :  { %v863_v36 = vmul.f32 %v1058_v32, %v862_v35 }
 0x5c2   :  { %v864_v37 = vadd.f32 %v1058_v32, %v863_v36 }
 0x5c4   :  { %v868_v34 = vsel %vm867_vm7, %v1058_v32, %v864_v37 }
 0x5c5   :  { %v873_v18 = vsel %vm870_vm8, %v872_v39, %v868_v34 }
 0x5c6   :  { %v874_v41 = vmul.f32 %v1056_v20, %v873_v18 }
 0x5cc   :  { %v902_v40 = vpop.permute.xlu1 %901 }
 0x5cd   :  { %922 = vmatpush.msrb.mxu2 %v902_v40 }
 0x5ce   :  { %1010 = vmatmul.msk.f32.vlgmr.msrb.gmra.mxu2 %vm222_vm2, %v874_v41 }
 0x5fd   :  { %v765_v43 = vpop.f32.mrf.mxu2 }
 0x5fe   :  { %v768_v48 = vadd.f32 %v765_v43, %v582_v47 }
 0x651   :  { %v924_v44 = vpop.f32.mrf.mxu2 }
 0x652   :  { %v929_v45 = vrot.slane %v924_v44, 7 }
 0x654   :  { %v930_v26 = vsel %vm196_vm0, %v929_v45, %v898_v46 }
 0x655   :  { %1011 = vmatmul.msk.f32.vlgmr.msra.gmra.mxu3 %vm222_vm2, %v930_v26 }
 0x6d8   :  { %v950_v49 = vpop.f32.mrf.mxu3 }
 0x6d9   :  { %v953_v50 = vadd.f32 %v950_v49, %v768_v48 }
 0x6db   :  { %v957_v52 = vadd.f32 %v1026_v24, %v953_v50 }
 0x6dd   :  { %959 = vst.msk [vmem:[#allocation11] sm:$0x3] %vm958_vm9, %v957_v52 }
 0x6de   :  { %970 = dma.vmem_to_hbm [thread:$0]  %s966_s19, 32, %s968_s22, [#allocation4]  }
 0x6df   :  { %1209 = dma.done.wait [#allocation4], 32  }
 0x6e0   :  { %1210 = vsyncadd [#allocation4], 4294967264 }
 0x6e1   :  { %975 = vsyncpa [#allocation3], 1 }
 0x6e2   :  { %976 = vsyncpa [#allocation6], 1 }
 0x6e3   :  { %977 = vsyncpa [#allocation9], 1 }
 0x6e4   :  { %978 = vsyncpa [#allocation4], 1 }

</bundles_post_ra>
